<compile_context>
chip_gen: v6e
topology: v6e:2x2x1
jax: 0.10.0
libtpu: 0.0.40
codegen_flags: <defaults>
</compile_context>

<pallas_src>
import functools

import jax
import jax.numpy as jnp
from jax.experimental import pallas as pl
from jax.experimental.pallas import tpu as pltpu

_SUB = 8  # sublane count (second-to-last dim tiling unit)


def _round_up(n, m):
    return ((n + m - 1) // m) * m


def _vmem_capacity_bytes():
    """Physical VMEM per TensorCore; conservative fallback if query fails."""
    try:
        return int(pltpu.get_tpu_info().vmem_capacity_bytes)
    except Exception:  # pragma: no cover - depends on jax version / backend
        return 64 * 1024 * 1024  # v7x per-TC size (smallest current gen)


def _mlp_kernel(x_ref, w1_ref, b1_ref, w2_ref, b2_ref, o_ref, *, use_bf16):
    x = x_ref[...]
    w1 = w1_ref[...]
    w2 = w2_ref[...]
    if use_bf16:
        x = x.astype(jnp.bfloat16)
        w1 = w1.astype(jnp.bfloat16)
        w2 = w2.astype(jnp.bfloat16)

    # fc1: [TM, I] @ [I, H] -> f32 accumulator (MXU)
    h = jnp.dot(x, w1, preferred_element_type=jnp.float32)
    # bias-add + ReLU on the f32 accumulator (VPU; f32 keeps v5e happy)
    h = jnp.maximum(h + b1_ref[...], 0.0)
    if use_bf16:
        h = h.astype(jnp.bfloat16)

    # fc2: [TM, H] @ [H, C] -> f32 accumulator (MXU)
    out = jnp.dot(h, w2, preferred_element_type=jnp.float32)
    o_ref[...] = (out + b2_ref[...]).astype(o_ref.dtype)


def multiple_parameters_forward(x, w1, b1, w2, b2, *, block_batch=512,
                                use_bf16=False):
    """Pallas implementation of MultipleParametersModule.forward.

    x : [B, input_size]        float32
    w1: [input_size, hidden]   float32  (= fc1.weight.T)
    b1: [hidden] or [1, hidden]
    w2: [hidden, num_classes]  float32  (= fc2.weight.T)
    b2: [num_classes] or [1, num_classes]
    returns [B, num_classes]   float32
    """
    x = jnp.asarray(x, jnp.float32)
    w1 = jnp.asarray(w1, jnp.float32)
    w2 = jnp.asarray(w2, jnp.float32)
    b1 = jnp.asarray(b1, jnp.float32).reshape(1, -1)
    b2 = jnp.asarray(b2, jnp.float32).reshape(1, -1)

    B, I = x.shape
    H = w1.shape[1]
    C = w2.shape[1]

    # ---- VMEM budgeting -------------------------------------------------
    vmem_cap = _vmem_capacity_bytes()                  # 64 MiB (v7x) .. 128 MiB
    vmem_limit = max(32 * 1024 * 1024,
                     min((vmem_cap * 3) // 4, 96 * 1024 * 1024))
    vmem_budget = vmem_limit - 2 * 1024 * 1024         # headroom for compiler

    # Resident weights/biases are double-buffered by the pipeline (2x).
    weight_bytes = 2 * 4 * (I * H + H + H * C + C)
    if weight_bytes > vmem_budget // 2:
        # TODO(synk): H-tiled fallback (accumulate output over hidden tiles)
        # instead of keeping both weight matrices fully VMEM-resident.
        raise ValueError(
            "Weights too large to stay VMEM-resident on this chip; "
            f"need {weight_bytes} bytes, budget {vmem_budget // 2}.")

    # Per batch-row bytes: x tile (2x buffered) + out tile (2x buffered)
    # + f32 hidden activation + f32 fc2 accumulator.
    bytes_per_row = 4 * (2 * I + 2 * C + H + C)
    tm_cap = max(_SUB,
                 ((vmem_budget - weight_bytes) // bytes_per_row) // _SUB * _SUB)

    # ---- Batch tile selection -------------------------------------------
    TM = min(block_batch, tm_cap, _round_up(B, _SUB))
    TM = max(_SUB, (TM // _SUB) * _SUB)                # multiple of 8
    if B >= 2 * _SUB:
        # >= 2 grid steps so v7x's second TensorCore gets work.
        TM = min(TM, _round_up((B + 1) // 2, _SUB))
    TM = max(_SUB, TM)
    Bp = _round_up(B, TM)

    # Only pad the batch (zeros are mathematically neutral through the MLP).
    x_p = x if Bp == B else jnp.pad(x, ((0, Bp - B), (0, 0)))

    grid = (Bp // TM,)

    cost = pl.CostEstimate(
        flops=2 * Bp * (I * H + H * C),
        transcendentals=0,
        bytes_accessed=4 * (Bp * I + I * H + H + H * C + C + Bp * C),
    )

    kernel = functools.partial(_mlp_kernel, use_bf16=use_bf16)

    out_p = pl.pallas_call(
        kernel,
        out_shape=jax.ShapeDtypeStruct((Bp, C), jnp.float32),
        grid_spec=pl.GridSpec(
            grid=grid,
            in_specs=[
                pl.BlockSpec((TM, I), lambda i: (i, 0)),  # x: tiled over batch
                pl.BlockSpec((I, H), lambda i: (0, 0)),   # w1: VMEM-resident
                pl.BlockSpec((1, H), lambda i: (0, 0)),   # b1: VMEM-resident
                pl.BlockSpec((H, C), lambda i: (0, 0)),   # w2: VMEM-resident
                pl.BlockSpec((1, C), lambda i: (0, 0)),   # b2: VMEM-resident
            ],
            out_specs=pl.BlockSpec((TM, C), lambda i: (i, 0)),
        ),
        compiler_params=pltpu.CompilerParams(
            dimension_semantics=("parallel",),
            vmem_limit_bytes=vmem_limit,
        ),
        cost_estimate=cost,
    )(x_p, w1, b1, w2, b2)

    return out_p[:B]


if __name__ == "__main__":
    # Small shapes consistent with the module: Linear(input, hidden),
    # Linear(hidden, num_classes).  batch chosen so the grid has >1 step.
    batch = 24
    input_size = 32
    hidden_size = 64
    num_classes = 16

    key = jax.random.PRNGKey(0)
    kx, kw1, kb1, kw2, kb2 = jax.random.split(key, 5)

    x = jax.random.normal(kx, (batch, input_size), dtype=jnp.float32)

    # nn.Linear-style uniform init (+-1/sqrt(fan_in)); weights stored
    # as [in_features, out_features] (transpose of torch's layout).
    lim1 = 1.0 / (input_size ** 0.5)
    lim2 = 1.0 / (hidden_size ** 0.5)
    w1 = jax.random.uniform(kw1, (input_size, hidden_size),
                            minval=-lim1, maxval=lim1, dtype=jnp.float32)
    b1 = jax.random.uniform(kb1, (hidden_size,),
                            minval=-lim1, maxval=lim1, dtype=jnp.float32)
    w2 = jax.random.uniform(kw2, (hidden_size, num_classes),
                            minval=-lim2, maxval=lim2, dtype=jnp.float32)
    b2 = jax.random.uniform(kb2, (num_classes,),
                            minval=-lim2, maxval=lim2, dtype=jnp.float32)

    out = multiple_parameters_forward(x, w1, b1, w2, b2)
    out = jax.block_until_ready(out)

    # Pure-JAX reference check (exact fp32 path).
    ref = jnp.maximum(x @ w1 + b1[None, :], 0.0) @ w2 + b2[None, :]
    assert out.shape == (batch, num_classes)
    assert jnp.allclose(out, ref, atol=1e-5, rtol=1e-5)

    print("KERNEL_OK")
</pallas_src>

<mosaic_0001>
module attributes {stable_mosaic.version = 11 : i64} {
  func.func @_mlp_kernel(%arg0: i32, %arg1: memref<16x32xf32, #tpu.memory_space<vmem>>, %arg2: memref<32x64xf32, #tpu.memory_space<vmem>>, %arg3: memref<1x64xf32, #tpu.memory_space<vmem>>, %arg4: memref<64x16xf32, #tpu.memory_space<vmem>>, %arg5: memref<1x16xf32, #tpu.memory_space<vmem>>, %arg6: memref<16x16xf32, #tpu.memory_space<vmem>>) attributes {dimension_semantics = [#tpu.dimension_semantics<parallel>], iteration_bounds = array<i64: 2>, scalar_prefetch = 0 : i64, scratch_operands = 0 : i64, tpu.core_type = #tpu.core_type<tc>, window_params = [{transform_indices = @transform_0, window_bounds = array<i64: 16, 32>}, {pipeline_mode = #tpu.pipeline_mode<synchronous>, transform_indices = @transform_1, window_bounds = array<i64: 32, 64>}, {pipeline_mode = #tpu.pipeline_mode<synchronous>, transform_indices = @transform_2, window_bounds = array<i64: 1, 64>}, {pipeline_mode = #tpu.pipeline_mode<synchronous>, transform_indices = @transform_3, window_bounds = array<i64: 64, 16>}, {pipeline_mode = #tpu.pipeline_mode<synchronous>, transform_indices = @transform_4, window_bounds = array<i64: 1, 16>}, {transform_indices = @transform_5, window_bounds = array<i64: 16, 16>}]} {
    %c0 = arith.constant 0 : index
    %c0_0 = arith.constant 0 : index
    %0 = vector.load %arg1[%c0, %c0_0] : memref<16x32xf32, #tpu.memory_space<vmem>>, vector<16x32xf32>
    %c0_1 = arith.constant 0 : index
    %c0_2 = arith.constant 0 : index
    %1 = vector.load %arg2[%c0_1, %c0_2] : memref<32x64xf32, #tpu.memory_space<vmem>>, vector<32x64xf32>
    %c0_3 = arith.constant 0 : index
    %c0_4 = arith.constant 0 : index
    %2 = vector.load %arg4[%c0_3, %c0_4] : memref<64x16xf32, #tpu.memory_space<vmem>>, vector<64x16xf32>
    %cst = arith.constant dense<0.000000e+00> : vector<16x64xf32>
    %3 = tpu.matmul %0, %1, %cst {dimension_numbers = #tpu.dot_dimension_numbers<[1], [0], [0], [1], [0, 0, 1, 1], [], []>} : vector<16x32xf32>, vector<32x64xf32>, vector<16x64xf32> -> vector<16x64xf32>
    %c0_5 = arith.constant 0 : index
    %c0_6 = arith.constant 0 : index
    %4 = vector.load %arg3[%c0_5, %c0_6] : memref<1x64xf32, #tpu.memory_space<vmem>>, vector<1x64xf32>
    %5 = vector.broadcast %4 : vector<1x64xf32> to vector<16x64xf32>
    %6 = arith.addf %3, %5 : vector<16x64xf32>
    %cst_7 = arith.constant 0.000000e+00 : f32
    %7 = vector.broadcast %cst_7 : f32 to vector<16x64xf32>
    %8 = arith.maximumf %6, %7 : vector<16x64xf32>
    %cst_8 = arith.constant dense<0.000000e+00> : vector<16x16xf32>
    %9 = tpu.matmul %8, %2, %cst_8 {dimension_numbers = #tpu.dot_dimension_numbers<[1], [0], [0], [1], [0, 0, 1, 1], [], []>} : vector<16x64xf32>, vector<64x16xf32>, vector<16x16xf32> -> vector<16x16xf32>
    %c0_9 = arith.constant 0 : index
    %c0_10 = arith.constant 0 : index
    %10 = vector.load %arg5[%c0_9, %c0_10] : memref<1x16xf32, #tpu.memory_space<vmem>>, vector<1x16xf32>
    %11 = vector.broadcast %10 : vector<1x16xf32> to vector<16x16xf32>
    %12 = arith.addf %9, %11 : vector<16x16xf32>
    %c0_11 = arith.constant 0 : index
    %c0_12 = arith.constant 0 : index
    %13 = vector.load %arg6[%c0_11, %c0_12] : memref<16x16xf32, #tpu.memory_space<vmem>>, vector<16x16xf32>
    tpu.vector_store %arg6[%c0_11, %c0_12], %12 {strides = array<i32>} : memref<16x16xf32, #tpu.memory_space<vmem>>, vector<16x16xf32>,
    return
  }
  func.func @transform_0(%arg0: i32) -> (i32, i32) {
    %c0_i32 = arith.constant 0 : i32
    %c0_i32_0 = arith.constant 0 : i32
    return %arg0, %c0_i32 : i32, i32
  }
  func.func @transform_1(%arg0: i32) -> (i32, i32) {
    %c0_i32 = arith.constant 0 : i32
    %c0_i32_0 = arith.constant 0 : i32
    %c0_i32_1 = arith.constant 0 : i32
    return %c0_i32, %c0_i32_0 : i32, i32
  }
  func.func @transform_2(%arg0: i32) -> (i32, i32) {
    %c0_i32 = arith.constant 0 : i32
    %c0_i32_0 = arith.constant 0 : i32
    %c0_i32_1 = arith.constant 0 : i32
    return %c0_i32, %c0_i32_0 : i32, i32
  }
  func.func @transform_3(%arg0: i32) -> (i32, i32) {
    %c0_i32 = arith.constant 0 : i32
    %c0_i32_0 = arith.constant 0 : i32
    %c0_i32_1 = arith.constant 0 : i32
    return %c0_i32, %c0_i32_0 : i32, i32
  }
  func.func @transform_4(%arg0: i32) -> (i32, i32) {
    %c0_i32 = arith.constant 0 : i32
    %c0_i32_0 = arith.constant 0 : i32
    %c0_i32_1 = arith.constant 0 : i32
    return %c0_i32, %c0_i32_0 : i32, i32
  }
  func.func @transform_5(%arg0: i32) -> (i32, i32) {
    %c0_i32 = arith.constant 0 : i32
    %c0_i32_0 = arith.constant 0 : i32
    return %arg0, %c0_i32 : i32, i32
  }
}

</mosaic_0001>

<bundles_post_ra>
// kernel: tpu_custom_call.1
= control target key start
LH: loop header
LB: loop body
LE: loop exit
PB: predicated region body
PF: predicated region fallthrough
CT: control target
= control target key end

     0   :  { %s590_s18 = smov 0   ;;  %s656_s0 = inlined_call_operand.vmem [shape: f32[32,32], index: 0, kind: input, shape index: {}]   ;;  %s657_s1 = inlined_call_operand.vmem [shape: f32[32,64], index: 1, kind: input, shape index: {}]   ;;  %s658_s2 = inlined_call_operand.vmem [shape: f32[1,64], index: 2, kind: input, shape index: {}]   ;;  %s659_s3 = inlined_call_operand.vmem [shape: f32[64,16], index: 3, kind: input, shape index: {}]   ;;  %s660_s4 = inlined_call_operand.vmem [shape: f32[1,16], index: 4, kind: input, shape index: {}]   ;;  %s661_s5 = inlined_call_operand.vmem [shape: f32[32,16], index: 5, kind: output, shape index: {}]  }
   0x1 LB: > { %s481_s19 = sadd.s32 4294967295, %s558_s18   ;;  %p485_p0 = scmp.ge.s32.totalorder %s558_s18, 1  ;;  %s558_s18 = sphi %s590_s18, %s15_s18  }
   0x2   : > { %p188_p1 = scmp.lt.s32.totalorder %s558_s18, 3 }
   0x4   : > { %p189_p2 = pnand %p485_p0, %p188_p1 }
   0x5   : > { %s486_s24 = sshll.u32 (!%p189_p2), %s481_s19, 1 }
   0x6   : > { %192 = sbr.rel (%p189_p2) target bundleno = 418 (0x1a2), region = 40  ;;  %p217_p3 = scmp.lt.s32.totalorder (!%p189_p2), %s486_s24, 3 }
   0xb   : > { %v233_v0 = vld [vmem:[%s657_s1 + $0x18] sm:$0xff]  ;;  %v232_v1 = vld [vmem:[%s657_s1 + $0x10] sm:$0xff]  ;;  %v231_v4 = vld [vmem:[%s657_s1 + $0x8] sm:$0xff]  ;;  %s663_s24 = smov (!%p217_p3, %s486_s24), 3  ;;  %vm249_vm0 = vcmask 261120   ;;  %vm340_vm1 = vcmask 523264  }
   0xc   : > { %514 = vmatprep.subr.mxu0 %v233_v0  ;;  %v241_v2 = vld [vmem:[%s659_s3 + $0x38] sm:$0xff]  ;;  %v240_v3 = vld [vmem:[%s659_s3 + $0x30] sm:$0xff]  ;;  %v239_v5 = vld [vmem:[%s659_s3 + $0x28] sm:$0xff]  ;;  %s487_s10 = sshll.u32 %s663_s24, 3  ;;  %vm422_vm2 = vcmask 130048  }
   0xd   : > { %515 = vmatpush3.msra.mxu0 %v233_v0  ;;  %525 = vmatprep.subr.mxu1 %v241_v2  ;;  %v230_v6 = vld [vmem:[%s657_s1] sm:$0xff]  ;;  %s220_s13 = scalar_lea.vmem %s656_s0, %s487_s10  ;;  %v237_v10 = vld [vmem:[%s659_s3 + $0x18] sm:$0xff]  ;;  %v236_v11 = vld [vmem:[%s659_s3 + $0x10] sm:$0xff]  ;;  %s226_s7 = scalar_lea.vmem %s661_s5, %s487_s10 }
   0xe   : > { %516 = vmatprep.subr.mxu0 %v232_v1  ;;  %526 = vmatpush3.msra.mxu1 %v241_v2  ;;  %v238_v7 = vld [vmem:[%s659_s3 + $0x20] sm:$0xff]  ;;  %v229_v9 = vld [vmem:[%s220_s13 + $0x8] sm:$0xff] }
   0xf   : > { %517 = vmatpush3.msra.mxu0 %v232_v1  ;;  %527 = vmatprep.subr.mxu1 %v240_v3  ;;  %v228_v8 = vld [vmem:[%s220_s13] sm:$0xff]  ;;  %v235_v12 = vld [vmem:[%s659_s3 + $0x8] sm:$0xff] }
  0x10   : > { %518 = vmatprep.subr.mxu0 %v231_v4  ;;  %528 = vmatpush3.msra.mxu1 %v240_v3  ;;  %v234_v13 = vld [vmem:[%s659_s3] sm:$0xff] }
  0x11   : > { %519 = vmatpush3.msra.mxu0 %v231_v4  ;;  %529 = vmatprep.subr.mxu1 %v239_v5  ;;  %v490_v14 = vld [vmem:[%s658_s2] ss:$0 sm:$0xff] }
  0x12   : > { %520 = vmatprep.subr.mxu0 %v230_v6  ;;  %530 = vmatpush3.msra.mxu1 %v239_v5  ;;  %v493_v22 = vld [vmem:[%s660_s4] ss:$0 sm:$0xff] }
  0x13   : > { %521 = vmatpush3.msra.mxu0 %v230_v6  ;;  %522 = vmatprep.mubr.msk.f32.mxu0 %vm249_vm0, %v228_v8 }
  0x14   : > { %523 = vmatmul.mubr.msk.f32.vlgmr.msra.gmra.mxu0 %vm249_vm0, %v229_v9  ;;  %531 = vmatprep.subr.mxu1 %v238_v7 }
  0x15   : > { %532 = vmatpush3.msra.mxu1 %v238_v7 }
  0x16   : > { %533 = vmatprep.subr.mxu1 %v237_v10 }
  0x17   : > { %534 = vmatpush3.msra.mxu1 %v237_v10 }
  0x18   : > { %535 = vmatprep.subr.mxu1 %v236_v11 }
  0x19   : > { %536 = vmatpush3.msra.mxu1 %v236_v11 }
  0x1a   : > { %537 = vmatprep.subr.mxu1 %v235_v12 }
  0x1b   : > { %538 = vmatpush3.msra.mxu1 %v235_v12 }
  0x1c   : > { %539 = vmatprep.subr.mxu1 %v234_v13 }
  0x1d   : > { %540 = vmatpush3.msra.mxu1 %v234_v13 }
  0xd4   : > { %v524_v15 = vpop.f32.mrf.mxu0 }
  0xd5   : > { %v328_v16 = vadd.f32 %v524_v15, %v490_v14 }
  0xd6   : > { %v322_v17 = vpop.f32.mrf.mxu0 }
  0xd7   : > { %v323_v18 = vadd.f32 %v490_v14, %v322_v17  ;;  %v332_v20 = vmax.f32 %v328_v16, 0.0 }
  0xd9   : > { %v331_v19 = vmax.f32 %v323_v18, 0.0 }
  0xdb   : > { %541 = vmatprep.mubr.msk.f32.mxu1 %vm340_vm1, %v331_v19 }
  0xdc   : > { %542 = vmatmul.mubr.msk.f32.vlgmr.msra.gmra.mxu1 %vm340_vm1, %v332_v20 }
 0x19c   : > { %v543_v21 = vpop.f32.mrf.mxu1 }
 0x19d   : > { %v419_v25 = vadd.f32 %v543_v21, %v493_v22 }
 0x19e   : > { %v413_v23 = vpop.f32.mrf.mxu1 }
 0x19f   : > { %v414_v24 = vadd.f32 %v493_v22, %v413_v23  ;;  %424 = vst.msk [vmem:[%s226_s7 + $0x8] sm:$0xff] %vm422_vm2, %v419_v25 }
 0x1a1   : > { %423 = vst.msk [vmem:[%s226_s7] sm:$0xff] %vm422_vm2, %v414_v24 }
 0x1a2 PF: > { %s15_s18 = sadd.s32 1, %s558_s18  }
 0x1a3   : > { %p12_p4 = scmp.ge.s32.totalorder %s15_s18, 4  }
 0x1a5   :  { %14 = sbr.rel (!%p12_p4) target bundleno = 1 (0x1), region = 70 }

</bundles_post_ra>
